<compile_context>
chip_gen: v6e
topology: v6e:2x2x1
jax: 0.10.0
libtpu: 0.0.40
codegen_flags: <defaults>
</compile_context>

<pallas_src>
import functools
import math

import jax
import jax.numpy as jnp
from jax.experimental import pallas as pl
from jax.experimental.pallas import tpu as pltpu


def make_pe_table(d_model: int, max_len: int = 5000) -> jax.Array:
    """Deterministic positional-encoding buffer, shape [max_len, 1, d_model], f32."""
    position = jnp.arange(0, max_len, dtype=jnp.float32)[:, None]            # [L, 1]
    div_term = jnp.exp(
        jnp.arange(0, d_model, 2, dtype=jnp.float32) * (-math.log(10000.0) / d_model)
    )                                                                          # [D/2]
    angles = position * div_term                                               # [L, D/2]
    pe = jnp.zeros((max_len, d_model), dtype=jnp.float32)
    pe = pe.at[:, 0::2].set(jnp.sin(angles))
    pe = pe.at[:, 1::2].set(jnp.cos(angles))
    # Keep the table in f32 (matches torch buffer numerics); cast at the add.
    return pe[:, None, :]                                                      # [L, 1, D]


def _pe_add_kernel(x_ref, pe_ref, o_ref, *, batch: int):
    # x_ref / o_ref: (s_blk, B*D) lane-dense slab; pe_ref: (s_blk, D) f32.
    pe = pe_ref[...]
    if batch > 1:
        # Broadcast over batch along the lane axis; cheap relative to the DMA stream.
        pe = jnp.concatenate([pe] * batch, axis=-1)                            # (s_blk, B*D)
    o_ref[...] = (x_ref[...].astype(jnp.float32) + pe).astype(o_ref.dtype)


def _round_up(n: int, m: int) -> int:
    return ((n + m - 1) // m) * m


def _choose_s_block(seq_len: int, row_bytes: int,
                    *, target_block_bytes: int = 2 << 20, min_grid: int = 2) -> int:
    """Largest multiple-of-8 row tile with an x-block of ~target bytes,
    capped so the grid keeps >= min_grid steps (v7x megacore) when S permits."""
    sb = max(8, (target_block_bytes // max(row_bytes, 1)) // 8 * 8)
    sb = min(sb, _round_up(seq_len, 8))
    if seq_len > 8 * min_grid:
        sb = min(sb, _round_up(pl.cdiv(seq_len, min_grid), 8))
    return max(8, sb)


def positional_encoding_forward(x, pe_table, *, s_block=None):
    """x: [S, B, D] (seq-first, like the PyTorch module). Returns x + pe[:S]."""
    S, B, D = x.shape
    assert pe_table.shape[0] >= S and pe_table.shape[-1] == D

    # Lane-dense views: free reshapes of contiguous row-major arrays (no HBM copy).
    x2 = x.reshape(S, B * D)
    pe2 = pe_table[:S].reshape(S, D).astype(jnp.float32)

    row_bytes = B * D * x.dtype.itemsize
    sb = _choose_s_block(S, row_bytes) if s_block is None else int(s_block)
    grid = (pl.cdiv(S, sb),)

    out2 = pl.pallas_call(
        functools.partial(_pe_add_kernel, batch=B),
        out_shape=jax.ShapeDtypeStruct((S, B * D), x.dtype),
        grid=grid,
        in_specs=[
            pl.BlockSpec((sb, B * D), lambda i: (i, 0)),   # x slab (lane-dense)
            pl.BlockSpec((sb, D), lambda i: (i, 0)),       # small pe tile, f32
        ],
        out_specs=pl.BlockSpec((sb, B * D), lambda i: (i, 0)),
        compiler_params=pltpu.CompilerParams(
            dimension_semantics=("parallel",),             # shards across v7x's 2 TCs
            vmem_limit_bytes=32 * 1024 * 1024,             # headroom on all generations
        ),
    )(x2, pe2)
    return out2.reshape(S, B, D)


if __name__ == "__main__":
    key = jax.random.PRNGKey(0)
    k0, k1 = jax.random.split(key)

    D = 32
    pe_table = make_pe_table(d_model=D, max_len=128)

    # Small shapes consistent with the module's forward: x is [seq, batch, d_model].
    S, B = 64, 2
    x = jax.random.normal(k0, (S, B, D), dtype=jnp.float32)
    out = jax.block_until_ready(positional_encoding_forward(x, pe_table))
    ref = x + pe_table[:S]            # eval-mode dropout == identity
    assert out.shape == (S, B, D)
    assert jnp.allclose(out, ref, atol=1e-6, rtol=1e-6)

    # Sequence length that does not divide the tile exercises the cdiv/ragged path.
    S2 = 37
    x_odd = jax.random.normal(k1, (S2, B, D), dtype=jnp.float32)
    out_odd = jax.block_until_ready(positional_encoding_forward(x_odd, pe_table))
    ref_odd = x_odd + pe_table[:S2]
    assert out_odd.shape == (S2, B, D)
    assert jnp.allclose(out_odd, ref_odd, atol=1e-6, rtol=1e-6)

    print("KERNEL_OK")
</pallas_src>

<mosaic_0001>
module attributes {stable_mosaic.version = 11 : i64} {
  func.func @_pe_add_kernel(%arg0: i32, %arg1: memref<32x64xf32, #tpu.memory_space<vmem>>, %arg2: memref<32x32xf32, #tpu.memory_space<vmem>>, %arg3: memref<32x64xf32, #tpu.memory_space<vmem>>) attributes {dimension_semantics = [#tpu.dimension_semantics<parallel>], iteration_bounds = array<i64: 2>, scalar_prefetch = 0 : i64, scratch_operands = 0 : i64, tpu.core_type = #tpu.core_type<tc>, window_params = [{transform_indices = @transform_0, window_bounds = array<i64: 32, 64>}, {transform_indices = @transform_1, window_bounds = array<i64: 32, 32>}, {transform_indices = @transform_2, window_bounds = array<i64: 32, 64>}]} {
    %c0 = arith.constant 0 : index
    %c0_0 = arith.constant 0 : index
    %0 = vector.load %arg2[%c0, %c0_0] : memref<32x32xf32, #tpu.memory_space<vmem>>, vector<32x32xf32>
    %1 = tpu.concatenate %0, %0 in 1 : vector<32x32xf32>, vector<32x32xf32> -> vector<32x64xf32>
    %c0_1 = arith.constant 0 : index
    %c0_2 = arith.constant 0 : index
    %2 = vector.load %arg1[%c0_1, %c0_2] : memref<32x64xf32, #tpu.memory_space<vmem>>, vector<32x64xf32>
    %3 = arith.addf %2, %1 : vector<32x64xf32>
    %c0_3 = arith.constant 0 : index
    %c0_4 = arith.constant 0 : index
    %4 = vector.load %arg3[%c0_3, %c0_4] : memref<32x64xf32, #tpu.memory_space<vmem>>, vector<32x64xf32>
    tpu.vector_store %arg3[%c0_3, %c0_4], %3 {strides = array<i32>} : memref<32x64xf32, #tpu.memory_space<vmem>>, vector<32x64xf32>,
    return
  }
  func.func @transform_0(%arg0: i32) -> (i32, i32) {
    %c0_i32 = arith.constant 0 : i32
    %c0_i32_0 = arith.constant 0 : i32
    return %arg0, %c0_i32 : i32, i32
  }
  func.func @transform_1(%arg0: i32) -> (i32, i32) {
    %c0_i32 = arith.constant 0 : i32
    %c0_i32_0 = arith.constant 0 : i32
    return %arg0, %c0_i32 : i32, i32
  }
  func.func @transform_2(%arg0: i32) -> (i32, i32) {
    %c0_i32 = arith.constant 0 : i32
    %c0_i32_0 = arith.constant 0 : i32
    return %arg0, %c0_i32 : i32, i32
  }
}

</mosaic_0001>

<bundles_post_ra>
// kernel: tpu_custom_call.1
= control target key start
LH: loop header
LB: loop body
LE: loop exit
PB: predicated region body
PF: predicated region fallthrough
CT: control target
= control target key end

     0   :  { %7 = vsyncpa [#allocation3], 0  ;;  %s547_s0 = inlined_call_operand.vmem [shape: f32[64,64], index: 0, kind: input, shape index: {}]   ;;  %s548_s1 = inlined_call_operand.vmem [shape: f32[64,32], index: 1, kind: input, shape index: {}]   ;;  %s549_s2 = inlined_call_operand.hbm [shape: f32[64,64], index: 2, kind: output, shape index: {}]  }
   0x1   :  { %9 = vsyncpa [#allocation3 + $0x1], 0  ;;  %s431_s9 = smov 0   ;;  %s433_s10 = smov 0  }
   0x2   :  { %s435_s11 = smov 0   ;;  %s437_s12 = smov 0  }
   0x3 LB: > { %s452_s13 = sadd.s32 4294967295, %s410_s12   ;;  %s293_s14 = sadd.s32 4294967294, %s410_s12   ;;  %s410_s12 = sphi %s437_s12, %s555_s12   ;;  %s406_s11 = sphi %s435_s11, %s554_s11   ;;  %s402_s10 = sphi %s433_s10, %s553_s10   ;;  %s398_s9 = sphi %s431_s9, %s552_s9  }
   0x4   : > { %s456_s15 = sadd.s32 1, %s410_s12   ;;  %s74_s16 = sadd.s32 1, %s406_s11 }
   0x5   : > { %s71_s17 = ssub.s32 %s410_s12, %s456_s15  ;;  %p84_p0 = scmp.ne.s32.totalorder %s406_s11, %s402_s10 }
   0x6   : > { %p72_p1 = scmp.eq.s32.totalorder %s71_s17, 0  ;;  %p85_p2 = scmp.eq.s32.totalorder %s452_s13, 1 }
   0x7   : > { %p90_p3 = scmp.ne.s32.totalorder %s402_s10, %s398_s9  ;;  %p91_p4 = scmp.eq.s32.totalorder %s293_s14, 1 }
   0x8   : > { %s467_s18 = scalar_select %p72_p1, %s406_s11, %s74_s16  }
   0x9   : > { %p469_p5 = por %p85_p2, %p84_p0  ;;  %p473_p6 = por %p91_p4, %p90_p3 }
   0xa   : > { %p296_p7 = scmp.ge.s32.totalorder %s410_s12, 1  ;;  %p127_p8 = scmp.lt.s32.totalorder %s410_s12, 3 }
   0xc   : > { %p128_p9 = pnand %p296_p7, %p127_p8 }
   0xd   : > { %s298_s21 = sshll.u32 (!%p128_p9), %s452_s13, 2  ;;  %s412_s26 = smov (!%p128_p9), 32  }
   0xe   : > { %131 = sbr.rel (%p128_p9) target bundleno = 159 (0x9f), region = 28  ;;  %p155_p10 = scmp.lt.s32.totalorder (!%p128_p9), %s298_s21, 7 }
   0xf   : > { %s151_s27 = sand.u32 (!%p128_p9), 1, %s402_s10   ;;  %s307_s6 = sshll.u32 (!%p128_p9), %s452_s13, 9 }
  0x10   : > { %s297_s3 = sshll.u32 (!%p128_p9), %s151_s27, 5  ;;  %s499_s14 = scalar_lea.hbm (!%p128_p9), %s549_s2, %s307_s6 }
  0x11   : > { %s153_s4 = scalar_lea.vmem (!%p128_p9), [#allocation2], %s297_s3  ;;  %s507_s13 = scalar_lea.sflag (!%p128_p9), [#allocation3], %s151_s27 }
  0x12   : > { %s219_s5 = sshll.u32 (!%p128_p9), %s153_s4, 4  ;;  %s413_s17 = smov (!%p128_p9), [#allocation2]   ;;  %s501_s5 = int_to_ptr.vmem [resolvable:$true] %s219_s5 }
  0x13   : > { %s557_s21 = smov (!%p155_p10, %s298_s21), 7  ;;  %vm187_vm0 = vcmask 261120   ;;  %vm200_vm1 = vcmask 523264   ;;  %s350_s16 = scalar_lea.vmem %s501_s5, 512 }
  0x14   : > { %s299_s22 = sshll.u32 %s557_s21, 3  ;;  %p351_p11 = scmp.ne.s32.totalorder %s501_s5, %s350_s16 }
  0x15   : > { %s164_s25 = scalar_lea.vmem %s548_s1, %s299_s22  ;;  %s158_s30 = scalar_lea.vmem %s547_s0, %s299_s22 }
  0x16   : > { %v169_v0 = vld [vmem:[%s164_s25 + $0x10] sm:$0xff]  ;;  %v167_v1 = vld [vmem:[%s164_s25] sm:$0xff]  ;;  %v170_v2 = vld [vmem:[%s164_s25 + $0x18] sm:$0xff]  ;;  %p352_p12 = pnand %p351_p11, %p469_p5  ;;  %s354_s21 = sshll.u32 %s413_s17, 4  ;;  %s355_s21 = int_to_ptr.vmem [resolvable:$false] %s354_s21 }
  0x17   : > { %179 = vrot.lane.b32.xlu1 %v169_v0, %s412_s26  ;;  %175 = vrot.lane.b32.xlu0 %v167_v1, %s412_s26  ;;  %v168_v3 = vld [vmem:[%s164_s25 + $0x8] sm:$0xff]  ;;  %v194_v4 = vld [vmem:[%s158_s30 + $0x10] sm:$0xff]  ;;  %s356_s22 = scalar_lea.vmem %s355_s21, 1024  ;;  %p357_p0 = scmp.lt.s32.totalorder %s501_s5, %s355_s21 }
  0x18   : > { %v192_v5 = vld [vmem:[%s158_s30] sm:$0xff]  ;;  %v195_v12 = vld [vmem:[%s158_s30 + $0x18] sm:$0xff]  ;;  %v193_v13 = vld [vmem:[%s158_s30 + $0x8] sm:$0xff]  ;;  %p353_p13 = pneg %p352_p12  ;;  %p358_p1 = scmp.lt.s32.totalorder %s356_s22, %s350_s16 }
  0x1a   : > { %p359_p2 = por %p358_p1, %p357_p0 }
  0x1b   : > { %181 = vrot.lane.b32.xlu1 %v170_v2, %s412_s26  ;;  %177 = vrot.lane.b32.xlu0 %v168_v3, %s412_s26 }
  0x1c   : > { %p360_p3 = pnand %p359_p2, %p353_p13 }
  0x89   : > { %v180_v6 = vpop.permute.xlu1 %179  ;;  %v176_v7 = vpop.permute.xlu0 %175 }
  0x8a   : > { %v190_v8 = vsel %vm187_vm0, %v169_v0, %v180_v6  ;;  %v188_v9 = vsel %vm187_vm0, %v167_v1, %v176_v7 }
  0x8b   : > { %v198_v10 = vadd.f32 %v194_v4, %v190_v8  ;;  %v196_v11 = vadd.f32 %v192_v5, %v188_v9 }
  0x8d   : > { %203 = vst.msk [vmem:[%s153_s4 + $0x10] sm:$0xff] %vm200_vm1, %v198_v10  ;;  %201 = vst.msk [vmem:[%s153_s4] sm:$0xff] %vm200_vm1, %v196_v11  ;;  %v182_v14 = vpop.permute.xlu1 %181  ;;  %v178_v15 = vpop.permute.xlu0 %177 }
  0x8e   : > { %v191_v16 = vsel %vm187_vm0, %v170_v2, %v182_v14  ;;  %v189_v17 = vsel %vm187_vm0, %v168_v3, %v178_v15 }
  0x8f   : > { %v199_v18 = vadd.f32 %v195_v12, %v191_v16  ;;  %v197_v19 = vadd.f32 %v193_v13, %v189_v17 }
  0x91   : > { %204 = vst.msk [vmem:[%s153_s4 + $0x18] sm:$0xff] %vm200_vm1, %v199_v18  ;;  %202 = vst.msk [vmem:[%s153_s4 + $0x8] sm:$0xff] %vm200_vm1, %v197_v19 }
  0x92   : > { %363 = shalt.err (!%p360_p3)
}
  0x93   : > { %s364_s23 = scalar_lea.hbm %s499_s14, 512  ;;  %s368_s26 = scalar_lea.hbm %s549_s2, 1024 }
  0x94   : > { %p365_p4 = scmp.ne.s32.totalorder %s499_s14, %s364_s23  ;;  %p369_p9 = scmp.lt.s32.totalorder %s499_s14, %s549_s2 }
  0x95   : > { %p370_p10 = scmp.lt.s32.totalorder %s368_s26, %s364_s23 }
  0x96   : > { %p366_p7 = pnand %p365_p4, %p469_p5 }
  0x97   : > { %p371_p11 = por %p370_p10, %p369_p9 }
  0x98   : > { %p367_p8 = pneg %p366_p7 }
  0x9a   : > { %p372_p12 = pnand %p371_p11, %p367_p8 }
  0x9c   : > { %375 = shalt.err (!%p372_p12)
}
  0x9d   : > { %s414_s29 = smov 128   ;;  %s415_s30 = smov 8  }
  0x9e   : > { %308 = dma.vmem_to_hbm [thread:$0]  (%p469_p5), %s501_s5, 512, %s499_s14, %s507_s13, %s414_s29, %s414_s29, %s415_s30  }
  0x9f PF: > { %p314_p13 = scmp.ge.s32.totalorder %s410_s12, 2  ;;  %s234_s3 = sand.u32 1, %s398_s9  }
  0xa0   : > { %s235_s4 = scalar_lea.sflag [#allocation3], %s234_s3 }
  0xa1   : > { %p311_p0 = pnand %p314_p13, %p473_p6 }
  0xa3   : > { %p312_p1 = pneg %p311_p0 }
  0xa5   : > { %393 = dma.done.wait (%p312_p1), %s235_s4, 512  }
  0xa6   : > { %395 = vsyncadd (%p312_p1), %s235_s4, 4294966784  ;;  %p12_p2 = scmp.ge.s32.totalorder %s456_s15, 4   ;;  %s552_s9 = smov %s402_s10 }
  0xa7   : > { %s553_s10 = smov %s406_s11  ;;  %s554_s11 = smov %s467_s18 }
  0xa8   : > { %s555_s12 = smov %s456_s15  ;;  %14 = sbr.rel (!%p12_p2) target bundleno = 3 (0x3), region = 66 }
  0xad   :  { %240 = vsyncpa [#allocation3], 1 }
  0xae   :  { %242 = vsyncpa [#allocation3 + $0x1], 1 }

</bundles_post_ra>
